<compile_context>
chip_gen: v7x
topology: tpu7x:2x2x1
jax: 0.10.0
libtpu: 0.0.40
codegen_flags: <defaults>
</compile_context>

<pallas_src>
import math
from functools import lru_cache

import jax
import jax.numpy as jnp
from jax.experimental import pallas as pl
from jax.experimental.pallas import tpu as pltpu

_LANE_CANDIDATES = (512, 256, 128)   # lane-dense widths (multiples of 128)
_SPLIT_THRESHOLD_BYTES = 4 * 1024 * 1024   # above this, force >= 2 grid steps


def _round_up(x, m):
    return ((x + m - 1) // m) * m


def _activate(y, activation):
    """activation(y) for the supported (static) activation names."""
    if activation == "relu":
        return jnp.maximum(y, 0)
    if activation == "leaky_relu":
        return jnp.where(y > 0, y, 0.01 * y)
    if activation == "selu":
        alpha = 1.6732632423543772
        scale = 1.0507009873554805
        return scale * jnp.where(y > 0, y, alpha * (jnp.exp(y) - 1.0))
    if activation == "none":
        return y
    raise ValueError(f"unsupported activation: {activation}")


def _make_kernel(activation):
    def kernel(x_ref, o_ref):
        x = x_ref[...]
        # blocks(x) + shortcut(x), both Identity -> x + x, then activation.
        o_ref[...] = _activate(x + x, activation).astype(o_ref.dtype)
    return kernel


@lru_cache(maxsize=1)
def _vmem_capacity_bytes():
    try:
        return int(pltpu.get_tpu_info().vmem_capacity_bytes)
    except Exception:
        return 64 * 1024 * 1024   # conservative (v7x-sized) fallback


def residual_block_forward(x, activation="relu", *, min_pallas_bytes=1 << 20,
                           alias_input=False, max_block_rows=None):
    """Forward pass of ResidualBlock(in_channels, out_channels, activation).

    x: any-shape float array (canonically NCHW). Returns same shape/dtype.
    min_pallas_bytes: below this total size, use a plain-jnp fast path.
    alias_input: add input_output_aliases={0: 0} (pair with jit donation).
    max_block_rows: optional cap on tile rows (testing / tuning).
    """
    _ = _activate(jnp.zeros((), jnp.float32), activation)  # validate name early

    orig_shape = x.shape
    dtype = x.dtype
    total = math.prod(orig_shape) if orig_shape else 1
    itemsize = jnp.dtype(dtype).itemsize

    # Tiny-tensor fast path: pallas launch overhead dominates; XLA fuses this.
    if total * itemsize < min_pallas_bytes:
        return _activate(x + x, activation)

    # Sublane multiple for this element width (8 for 32-bit, 16 for 16-bit, ...).
    sub = max(8, 32 // itemsize)

    # Pick the largest lane width that divides numel -> no pad on common shapes.
    lane = None
    for cand in _LANE_CANDIDATES:
        if total % cand == 0:
            lane = cand
            break
    if lane is None:
        lane = _LANE_CANDIDATES[0]
        rows = pl.cdiv(total, lane)
        padded_total = rows * lane
    else:
        rows = total // lane
        padded_total = total

    flat = x.reshape(-1)
    if padded_total != total:
        # Rare fallback (numel not divisible by 128). Zero pad is benign:
        # all supported activations map 0 -> 0 and the tail is sliced off.
        flat = jnp.pad(flat, (0, padded_total - total))
    x2d = flat.reshape(rows, lane)

    # ---- per-generation tile sizing ----------------------------------------
    row_bytes = lane * itemsize
    vmem_cap = _vmem_capacity_bytes()
    if vmem_cap >= 100 * 1024 * 1024:       # v5e / v6e (128 MiB VMEM)
        target_block_bytes = 16 * 1024 * 1024
    else:                                    # v7x (64 MiB VMEM)
        target_block_bytes = 8 * 1024 * 1024

    max_rows_by_bytes = max(sub, (target_block_bytes // row_bytes) // sub * sub)
    if max_block_rows is not None:
        max_rows_by_bytes = min(max_rows_by_bytes,
                                max(sub, (max_block_rows // sub) * sub))

    total_bytes = rows * row_bytes
    if rows <= max_rows_by_bytes and (total_bytes < _SPLIT_THRESHOLD_BYTES
                                      or rows < 2 * sub):
        block_rows = rows          # single full-array block (no (8,128) issue)
    else:
        # At least 2 grid steps (lets v7x shard across both TensorCores),
        # block_rows a sublane multiple; ragged edge block is masked by Pallas.
        half = _round_up(pl.cdiv(rows, 2), sub)
        block_rows = max(sub, min(max_rows_by_bytes, half))
    grid = (pl.cdiv(rows, block_rows),)

    block_bytes = block_rows * row_bytes
    # 2 input + 2 output double buffers + headroom, clamped to 3/4 of physical.
    vmem_limit = max(min(vmem_cap * 3 // 4, 4 * block_bytes + (8 << 20)),
                     32 << 20)

    out2d = pl.pallas_call(
        _make_kernel(activation),
        out_shape=jax.ShapeDtypeStruct(x2d.shape, dtype),
        grid_spec=pl.GridSpec(
            grid=grid,
            in_specs=[pl.BlockSpec((block_rows, lane), lambda i: (i, 0))],
            out_specs=pl.BlockSpec((block_rows, lane), lambda i: (i, 0)),
        ),
        compiler_params=pltpu.CompilerParams(
            dimension_semantics=("parallel",),
            vmem_limit_bytes=int(vmem_limit),
        ),
        input_output_aliases=({0: 0} if alias_input else {}),
    )(x2d)

    out_flat = out2d.reshape(-1)
    if padded_total != total:
        out_flat = out_flat[:total]
    return out_flat.reshape(orig_shape)


def _reference(x, activation="relu"):
    return _activate(x + x, activation)


if __name__ == "__main__":
    key = jax.random.PRNGKey(0)

    # 1) Small NCHW input consistent with the module; force the Pallas path.
    x = jax.random.normal(key, (2, 4, 16, 16), dtype=jnp.float32)
    ref = _reference(x, "relu")
    out = jax.block_until_ready(
        residual_block_forward(x, activation="relu", min_pallas_bytes=0))
    assert out.shape == x.shape and out.dtype == x.dtype
    assert jnp.allclose(out, ref, atol=1e-6), "mismatch vs reference (small)"

    # 1b) Default small-tensor fast path (no pallas) gives identical result.
    out_fast = jax.block_until_ready(residual_block_forward(x, activation="relu"))
    assert jnp.allclose(out_fast, ref, atol=1e-6), "mismatch (fast path)"

    # 2) Ragged edge-block masking test: rows=640, forced block_rows=256 ->
    #    grid=3 with a partially out-of-bounds last block whose OOB writes
    #    must be dropped.
    x3 = jax.random.normal(jax.random.PRNGKey(2), (5, 4, 128, 128), dtype=jnp.float32)
    ref3 = _reference(x3, "leaky_relu")
    out3 = jax.block_until_ready(
        residual_block_forward(x3, activation="leaky_relu",
                               min_pallas_bytes=0, max_block_rows=256))
    assert jnp.allclose(out3, ref3, atol=1e-6), "mismatch vs reference (ragged)"

    # 3) Larger input: default tiling (>=2 parallel grid steps), jitted with
    #    input donation + in-kernel input/output aliasing.
    x2 = jax.random.normal(jax.random.PRNGKey(1), (16, 16, 64, 64), dtype=jnp.float32)
    ref2 = _reference(x2, "relu")
    fwd = jax.jit(lambda a: residual_block_forward(a, activation="relu",
                                                   alias_input=True),
                  donate_argnums=(0,))
    out2 = jax.block_until_ready(fwd(x2))
    assert jnp.allclose(out2, ref2, atol=1e-6), "mismatch vs reference (tiled)"

    print("KERNEL_OK")
</pallas_src>

<mosaic_0001>
module attributes {stable_mosaic.version = 11 : i64} {
  func.func @kernel(%arg0: i32, %arg1: memref<4x512xf32, #tpu.memory_space<vmem>>, %arg2: memref<4x512xf32, #tpu.memory_space<vmem>>) attributes {dimension_semantics = [#tpu.dimension_semantics<parallel>], iteration_bounds = array<i64: 1>, scalar_prefetch = 0 : i64, scratch_operands = 0 : i64, tpu.core_type = #tpu.core_type<tc>, window_params = [{transform_indices = @transform_0, window_bounds = array<i64: 4, 512>}, {transform_indices = @transform_1, window_bounds = array<i64: 4, 512>}]} {
    %c0 = arith.constant 0 : index
    %c0_0 = arith.constant 0 : index
    %0 = vector.load %arg1[%c0, %c0_0] : memref<4x512xf32, #tpu.memory_space<vmem>>, vector<4x512xf32>
    %1 = arith.addf %0, %0 : vector<4x512xf32>
    %cst = arith.constant 0.000000e+00 : f32
    %2 = vector.broadcast %cst : f32 to vector<4x512xf32>
    %3 = arith.maximumf %1, %2 : vector<4x512xf32>
    %c0_1 = arith.constant 0 : index
    %c0_2 = arith.constant 0 : index
    %4 = vector.load %arg2[%c0_1, %c0_2] : memref<4x512xf32, #tpu.memory_space<vmem>>, vector<4x512xf32>
    tpu.vector_store %arg2[%c0_1, %c0_2], %3 {strides = array<i32>} : memref<4x512xf32, #tpu.memory_space<vmem>>, vector<4x512xf32>,
    return
  }
  func.func @transform_0(%arg0: i32) -> (i32, i32) {
    %c0_i32 = arith.constant 0 : i32
    %c0_i32_0 = arith.constant 0 : i32
    return %arg0, %c0_i32 : i32, i32
  }
  func.func @transform_1(%arg0: i32) -> (i32, i32) {
    %c0_i32 = arith.constant 0 : i32
    %c0_i32_0 = arith.constant 0 : i32
    return %arg0, %c0_i32 : i32, i32
  }
}

</mosaic_0001>

<bundles_post_ra>
// kernel: tpu_custom_call.1
= control target key start
LH: loop header
LB: loop body
LE: loop exit
PB: predicated region body
PF: predicated region fallthrough
CT: control target
= control target key end

     0   :  { %6 = vsyncpa [#allocation3], 0  ;;  %s130_s0 = inlined_call_operand.hbm [shape: f32[4,512], index: 0, kind: input, shape index: {}]   ;;  %s131_s1 = inlined_call_operand.hbm [shape: f32[4,512], index: 1, kind: output, shape index: {}]  }
   0x1   :  { %7 = vsyncpa [#allocation4], 0  ;;  %s94_s6 = smov [#allocation2]   ;;  %s46_s10 = scalar_lea.hbm %s130_s0, 256 }
   0x2   :  { %s14_s7 = sshll.u32 %s94_s6, 4  ;;  %p47_p0 = scmp.ne.s32.totalorder %s130_s0, %s46_s10  ;;  %s15_s7 = int_to_ptr.vmem [resolvable:$true] %s14_s7 }
   0x3   :  { %p50_p1 = scmp.lt.u32.totalorder %s46_s10, %s130_s0 }
   0x5   :  { %p52_p2 = pnand %p50_p1, %p47_p0 }
   0x7   :  { %55 = shalt.err (!%p52_p2)
}
   0x8   :  { %s56_s15 = scalar_lea.vmem %s15_s7, 256  ;;  %p61_p4 = scmp.lt.s32.totalorder %s15_s7, %s15_s7 }
   0x9   :  { %p57_p3 = scmp.ne.s32.totalorder %s15_s7, %s56_s15  ;;  %p62_p5 = scmp.lt.s32.totalorder %s56_s15, %s56_s15 }
   0xb   :  { %p63_p6 = por %p62_p5, %p61_p4 }
   0xd   :  { %p64_p7 = pnand %p63_p6, %p57_p3 }
   0xf   :  { %67 = shalt.err (!%p64_p7)
}
  0x10   :  { %17 = dma.hbm_to_vmem [thread:$0]  %s130_s0, 256, %s15_s7, [#allocation3]  }
  0x11   :  { %90 = dma.done.wait [#allocation3], 256  }
  0x12   :  { %91 = vsyncadd [#allocation3], 4294967040  ;;  %v21_v0 = vld [vmem:[#allocation2] sm:$0xff]  ;;  %v22_v1 = vld [vmem:[#allocation2 + $0x8] sm:$0xff]  ;;  %s95_s18 = smov [#allocation5]  }
  0x13   :  { %s35_s19 = sshll.u32 %s95_s18, 4  ;;  %v23_v2 = vadd.f32 %v21_v0, %v21_v0  ;;  %v24_v3 = vadd.f32 %v22_v1, %v22_v1  ;;  %s36_s19 = int_to_ptr.vmem [resolvable:$true] %s35_s19 }
  0x14   :  { %s68_s20 = scalar_lea.vmem %s36_s19, 256  ;;  %p73_p9 = scmp.lt.s32.totalorder %s36_s19, %s36_s19 }
  0x15   :  { %v25_v4 = vmax.f32 %v23_v2, 0.0  ;;  %v26_v5 = vmax.f32 %v24_v3, 0.0  ;;  %p69_p8 = scmp.ne.s32.totalorder %s36_s19, %s68_s20  ;;  %p74_p10 = scmp.lt.s32.totalorder %s68_s20, %s68_s20 }
  0x17   :  { %27 = vst [vmem:[#allocation5] sm:$0xff] %v25_v4  ;;  %28 = vst [vmem:[#allocation5 + $0x8] sm:$0xff] %v26_v5  ;;  %p75_p11 = por %p74_p10, %p73_p9 }
  0x19   :  { %p76_p12 = pnand %p75_p11, %p69_p8 }
  0x1b   :  { %79 = shalt.err (!%p76_p12)
}
  0x1c   :  { %s80_s22 = scalar_lea.hbm %s131_s1, 256 }
  0x1d   :  { %p81_p13 = scmp.ne.s32.totalorder %s131_s1, %s80_s22  ;;  %p84_p0 = scmp.lt.u32.totalorder %s80_s22, %s131_s1 }
  0x1f   :  { %p86_p1 = pnand %p84_p0, %p81_p13 }
  0x21   :  { %89 = shalt.err (!%p86_p1)
}
  0x22   :  { %38 = dma.vmem_to_hbm [thread:$0]  %s36_s19, 256, %s131_s1, [#allocation4]  }
  0x23   :  { %92 = dma.done.wait [#allocation4], 256  }
  0x24   :  { %93 = vsyncadd [#allocation4], 4294967040 }
  0x25   :  { %42 = vsyncpa [#allocation3], 1 }
  0x26   :  { %43 = vsyncpa [#allocation4], 1 }

</bundles_post_ra>
